<compile_context>
chip_gen: v6e
topology: v6e:2x2x1
jax: 0.10.0
libtpu: 0.0.40
codegen_flags: <defaults>
</compile_context>

<pallas_src>
import functools

import jax
import jax.numpy as jnp
from jax.experimental import pallas as pl
from jax.experimental.pallas import tpu as pltpu


def _round_up(x, m):
    return ((x + m - 1) // m) * m


def _lstm_cell_kernel(x_ref, h_ref, wih_ref, whh_ref, b_ref, c_ref,
                      nh_ref, nc_ref):
    """Grid = (batch tiles i, gate-column tiles j).  No K axis.

    x_ref   : (tm, D_pad)          input tile (compute dtype)
    h_ref   : (tm, Hk_pad)         prev_h tile (compute dtype)
    wih_ref : (1, D_pad, 4*th)     gate-interleaved W_ih column tile
    whh_ref : (1, Hk_pad, 4*th)    gate-interleaved W_hh column tile
    b_ref   : (1, 1, 4*th)         fused bias (b_ih + b_hh), f32
    c_ref   : (tm, th)             prev_c tile
    nh_ref  : (tm, th)             next_h tile (out, prev_h dtype)
    nc_ref  : (tm, th)             next_c tile (out, prev_c dtype)
    """
    th = nh_ref.shape[1]

    # Single fused-gate affine per operand: (tm, K) @ (K, 4*th) on the MXU,
    # f32 accumulation stays inside the MXU pipeline (no VMEM accumulator).
    aff = jnp.dot(x_ref[...], wih_ref[0], preferred_element_type=jnp.float32)
    aff = aff + jnp.dot(h_ref[...], whh_ref[0],
                        preferred_element_type=jnp.float32)
    aff = aff + b_ref[0].astype(jnp.float32)

    def sigmoid(a):
        # sigmoid(x) == 0.5 * tanh(0.5 * x) + 0.5 -> a single EUP op; the
        # extra mul/add ride free in VALU slots.
        return 0.5 * jnp.tanh(0.5 * a) + 0.5

    # Gate slices at multiples of th (th is a multiple of 128 -> lane-aligned,
    # no cross-lane relayout).
    i_g = sigmoid(aff[:, 0 * th:1 * th])
    f_g = sigmoid(aff[:, 1 * th:2 * th])
    g_g = jnp.tanh(aff[:, 2 * th:3 * th])
    o_g = sigmoid(aff[:, 3 * th:4 * th])

    c_prev = c_ref[...].astype(jnp.float32)
    next_c = f_g * c_prev + i_g * g_g
    next_h = o_g * jnp.tanh(next_c)

    nc_ref[...] = next_c.astype(nc_ref.dtype)
    nh_ref[...] = next_h.astype(nh_ref.dtype)


def prepare_lstm_weights(w_ih, w_hh, b_ih, b_hh, *,
                         compute_dtype=jnp.bfloat16, th=None,
                         weight_vmem_budget=24 * 1024 * 1024):
    """One-time weight relayout.  Call at parameter init, NOT per timestep.

    Returns (wih_p, whh_p, b_p):
      wih_p : (n_j, D_pad, 4*th)   gate-interleaved at th granularity
      whh_p : (n_j, Hk_pad, 4*th)
      b_p   : (n_j, 1, 4*th)       b_ih + b_hh, f32
    """
    D, H4 = w_ih.shape
    H = H4 // 4
    assert w_hh.shape == (H, 4 * H)

    D_pad = _round_up(D, 128)
    Hk_pad = _round_up(H, 128)

    th = th or min(512, _round_up(H, 128))
    assert th % 128 == 0, "th must be a multiple of 128"
    w_item = jnp.dtype(compute_dtype).itemsize
    # Shrink the per-gate column tile until double-buffered weight tiles fit
    # the budget (keeps the kernel safe on v7x's 64 MiB VMEM as well).
    while th > 128 and 2 * (D_pad + Hk_pad) * 4 * th * w_item > weight_vmem_budget:
        th //= 2
    H_pad = _round_up(H, th)
    n_j = H_pad // th

    def relayout(w, k, k_pad):
        w = w.reshape(k, 4, H).astype(compute_dtype)
        wp = jnp.zeros((k_pad, 4, H_pad), compute_dtype).at[:k, :, :H].set(w)
        # (k_pad, 4, n_j, th) -> (n_j, k_pad, 4, th) -> (n_j, k_pad, 4*th):
        # column tile j holds [i-gate | f-gate | g-gate | o-gate] blocks of
        # width th, so gate slicing in the kernel is lane-aligned and free.
        return wp.reshape(k_pad, 4, n_j, th).transpose(2, 0, 1, 3).reshape(
            n_j, k_pad, 4 * th)

    wih_p = relayout(w_ih, D, D_pad)
    whh_p = relayout(w_hh, H, Hk_pad)

    b = jnp.zeros((4 * H,), jnp.float32)
    if b_ih is not None:
        b = b + b_ih.astype(jnp.float32)
    if b_hh is not None:
        b = b + b_hh.astype(jnp.float32)
    b = b.reshape(4, H)
    b_p = jnp.zeros((4, H_pad), jnp.float32).at[:, :H].set(b)
    b_p = b_p.reshape(4, n_j, th).transpose(1, 0, 2).reshape(n_j, 1, 4 * th)

    return wih_p, whh_p, b_p


def _pad_cast_2d(a, rows, cols, dtype):
    # Skip the pad copy entirely when the operand is already tile-aligned.
    if a.shape == (rows, cols):
        return a if a.dtype == dtype else a.astype(dtype)
    out = jnp.zeros((rows, cols), dtype)
    return out.at[:a.shape[0], :a.shape[1]].set(a.astype(dtype))


@functools.partial(jax.jit,
                   static_argnames=("hidden_size", "tm", "vmem_limit_bytes"))
def lstm_cell(x, prev_h, prev_c, wih_p, whh_p, b_p, *, hidden_size,
              tm=None, vmem_limit_bytes=64 * 1024 * 1024):
    """One LSTMCell step.  Weights must come from prepare_lstm_weights()."""
    N, D = x.shape
    H = hidden_size
    assert prev_h.shape == (N, H) and prev_c.shape == (N, H)

    compute_dtype = wih_p.dtype
    n_j, D_pad, th4 = wih_p.shape
    Hk_pad = whh_p.shape[1]
    th = th4 // 4
    H_pad = n_j * th
    assert D <= D_pad and H <= Hk_pad and H <= H_pad

    w_item = jnp.dtype(compute_dtype).itemsize
    c_item = jnp.dtype(prev_c.dtype).itemsize
    h_item = jnp.dtype(prev_h.dtype).itemsize
    # Double-buffered weight + bias tiles (index_map depends only on j).
    weight_bytes = 2 * (D_pad + Hk_pad) * th4 * w_item + 2 * th4 * 4

    if tm is None:
        # Full padded batch in one tile whenever it fits -> weights streamed
        # from HBM exactly once.
        tm = min(1024, _round_up(N, 8))

        def act_bytes(t):
            return (2 * t * (D_pad + Hk_pad) * w_item       # x, h (2 buffers each)
                    + 2 * t * th * c_item                   # prev_c blocks
                    + 2 * t * th * (h_item + c_item)        # next_h / next_c blocks
                    + 6 * t * th4)                          # f32 affine + gate temps

        while tm > 8 and weight_bytes + act_bytes(tm) > vmem_limit_bytes - (8 << 20):
            tm = max(8, _round_up(tm // 2, 8))
    assert tm % 8 == 0, "tm must be a multiple of 8"
    N_pad = _round_up(N, tm)

    x_p = _pad_cast_2d(x, N_pad, D_pad, compute_dtype)
    h_p = _pad_cast_2d(prev_h, N_pad, Hk_pad, compute_dtype)
    c_p = _pad_cast_2d(prev_c, N_pad, H_pad, prev_c.dtype)

    # Batch tiles outer, gate-column tiles inner: for the common 1-batch-tile
    # case the weight stream is read once.  Both axes are 'parallel' so v7x
    # megacore can shard them when the grid has >= 2 blocks.
    grid = (N_pad // tm, n_j)

    cost = pl.CostEstimate(
        flops=2 * N_pad * (D_pad + Hk_pad) * 4 * H_pad,
        transcendentals=5 * N_pad * H_pad,
        bytes_accessed=(N_pad * (D_pad + Hk_pad) * w_item          # x, h
                        + (D_pad + Hk_pad) * 4 * H_pad * w_item    # weights
                        + n_j * th4 * 4                            # bias
                        + N_pad * H_pad * c_item                   # prev_c
                        + N_pad * H_pad * (h_item + c_item)),      # outputs
    )

    next_h_p, next_c_p = pl.pallas_call(
        _lstm_cell_kernel,
        out_shape=(jax.ShapeDtypeStruct((N_pad, H_pad), prev_h.dtype),
                   jax.ShapeDtypeStruct((N_pad, H_pad), prev_c.dtype)),
        grid_spec=pltpu.PrefetchScalarGridSpec(
            num_scalar_prefetch=0,
            grid=grid,
            in_specs=[
                pl.BlockSpec((tm, D_pad), lambda i, j: (i, 0)),          # x
                pl.BlockSpec((tm, Hk_pad), lambda i, j: (i, 0)),         # prev_h
                pl.BlockSpec((1, D_pad, th4), lambda i, j: (j, 0, 0)),   # W_ih
                pl.BlockSpec((1, Hk_pad, th4), lambda i, j: (j, 0, 0)),  # W_hh
                pl.BlockSpec((1, 1, th4), lambda i, j: (j, 0, 0)),       # bias
                pl.BlockSpec((tm, th), lambda i, j: (i, j)),             # prev_c
            ],
            out_specs=(
                pl.BlockSpec((tm, th), lambda i, j: (i, j)),             # next_h
                pl.BlockSpec((tm, th), lambda i, j: (i, j)),             # next_c
            ),
        ),
        compiler_params=pltpu.CompilerParams(
            dimension_semantics=("parallel", "parallel"),
            vmem_limit_bytes=vmem_limit_bytes),
        cost_estimate=cost,
    )(x_p, h_p, wih_p, whh_p, b_p, c_p)

    # Strip padding.
    return next_h_p[:N, :H], next_c_p[:N, :H]


def lstm_cell_ref(x, prev_h, prev_c, w_ih, w_hh, b_ih, b_hh):
    affine = x @ w_ih + prev_h @ w_hh + b_ih + b_hh
    ai, af, ag, ao = jnp.split(affine, 4, axis=1)
    i = jax.nn.sigmoid(ai)
    f = jax.nn.sigmoid(af)
    g = jnp.tanh(ag)
    o = jax.nn.sigmoid(ao)
    next_c = f * prev_c + i * g
    next_h = o * jnp.tanh(next_c)
    return next_h, next_c


if __name__ == "__main__":
    N, D, H = 8, 16, 32
    key = jax.random.PRNGKey(0)
    k_x, k_h, k_c, k_wih, k_whh, k_bih, k_bhh = jax.random.split(key, 7)

    # Deterministic "init_parameters": uniform(-stdv, stdv), stdv = 1/sqrt(H).
    stdv = 1.0 / jnp.sqrt(jnp.float32(H))
    w_ih = jax.random.uniform(k_wih, (D, 4 * H), jnp.float32, -stdv, stdv)
    w_hh = jax.random.uniform(k_whh, (H, 4 * H), jnp.float32, -stdv, stdv)
    b_ih = jax.random.uniform(k_bih, (4 * H,), jnp.float32, -stdv, stdv)
    b_hh = jax.random.uniform(k_bhh, (4 * H,), jnp.float32, -stdv, stdv)

    x = jax.random.normal(k_x, (N, D), jnp.float32)
    prev_h = jax.random.normal(k_h, (N, H), jnp.float32)
    prev_c = jax.random.normal(k_c, (N, H), jnp.float32)

    ref_h, ref_c = lstm_cell_ref(x, prev_h, prev_c, w_ih, w_hh, b_ih, b_hh)

    # ---- exact-semantics (f32) path ----------------------------------------
    wih_f, whh_f, b_f = prepare_lstm_weights(w_ih, w_hh, b_ih, b_hh,
                                             compute_dtype=jnp.float32)
    h32, c32 = lstm_cell(x, prev_h, prev_c, wih_f, whh_f, b_f, hidden_size=H)
    jax.block_until_ready((h32, c32))
    assert h32.shape == (N, H) and c32.shape == (N, H)
    assert h32.dtype == prev_h.dtype and c32.dtype == prev_c.dtype
    assert jnp.allclose(h32, ref_h, atol=1e-5, rtol=1e-5)
    assert jnp.allclose(c32, ref_c, atol=1e-5, rtol=1e-5)

    # ---- default fast path: bf16 matmul operands, f32 accumulation ---------
    wih_b, whh_b, b_b = prepare_lstm_weights(w_ih, w_hh, b_ih, b_hh,
                                             compute_dtype=jnp.bfloat16)
    h16, c16 = lstm_cell(x, prev_h, prev_c, wih_b, whh_b, b_b, hidden_size=H)
    jax.block_until_ready((h16, c16))
    assert jnp.allclose(h16, ref_h, atol=5e-2, rtol=5e-2)
    assert jnp.allclose(c16, ref_c, atol=5e-2, rtol=5e-2)

    print("KERNEL_OK")
</pallas_src>

<mosaic_0001>
module attributes {stable_mosaic.version = 11 : i64} {
  func.func @_lstm_cell_kernel(%arg0: i32, %arg1: i32, %arg2: memref<8x128xf32, #tpu.memory_space<vmem>>, %arg3: memref<8x128xf32, #tpu.memory_space<vmem>>, %arg4: memref<1x128x512xf32, #tpu.memory_space<vmem>>, %arg5: memref<1x128x512xf32, #tpu.memory_space<vmem>>, %arg6: memref<1x1x512xf32, #tpu.memory_space<vmem>>, %arg7: memref<8x128xf32, #tpu.memory_space<vmem>>, %arg8: memref<8x128xf32, #tpu.memory_space<vmem>>, %arg9: memref<8x128xf32, #tpu.memory_space<vmem>>) attributes {dimension_semantics = [#tpu.dimension_semantics<parallel>, #tpu.dimension_semantics<parallel>], iteration_bounds = array<i64: 1, 1>, scalar_prefetch = 0 : i64, scratch_operands = 0 : i64, tpu.core_type = #tpu.core_type<tc>, window_params = [{transform_indices = @transform_0, window_bounds = array<i64: 8, 128>}, {transform_indices = @transform_1, window_bounds = array<i64: 8, 128>}, {transform_indices = @transform_2, window_bounds = array<i64: 1, 128, 512>}, {transform_indices = @transform_3, window_bounds = array<i64: 1, 128, 512>}, {transform_indices = @transform_4, window_bounds = array<i64: 1, 1, 512>}, {transform_indices = @transform_5, window_bounds = array<i64: 8, 128>}, {transform_indices = @transform_6, window_bounds = array<i64: 8, 128>}, {transform_indices = @transform_7, window_bounds = array<i64: 8, 128>}]} {
    %c0 = arith.constant 0 : index
    %c0_0 = arith.constant 0 : index
    %0 = vector.load %arg2[%c0, %c0_0] : memref<8x128xf32, #tpu.memory_space<vmem>>, vector<8x128xf32>
    %c0_1 = arith.constant 0 : index
    %c0_2 = arith.constant 0 : index
    %c0_3 = arith.constant 0 : index
    %1 = vector.load %arg4[%c0_1, %c0_2, %c0_3] : memref<1x128x512xf32, #tpu.memory_space<vmem>>, vector<1x128x512xf32>
    %2 = vector.shape_cast %1 : vector<1x128x512xf32> to vector<128x512xf32>
    %cst = arith.constant dense<0.000000e+00> : vector<8x512xf32>
    %3 = tpu.matmul %0, %2, %cst {dimension_numbers = #tpu.dot_dimension_numbers<[1], [0], [0], [1], [0, 0, 1, 1], [], []>} : vector<8x128xf32>, vector<128x512xf32>, vector<8x512xf32> -> vector<8x512xf32>
    %c0_4 = arith.constant 0 : index
    %c0_5 = arith.constant 0 : index
    %4 = vector.load %arg3[%c0_4, %c0_5] : memref<8x128xf32, #tpu.memory_space<vmem>>, vector<8x128xf32>
    %c0_6 = arith.constant 0 : index
    %c0_7 = arith.constant 0 : index
    %c0_8 = arith.constant 0 : index
    %5 = vector.load %arg5[%c0_6, %c0_7, %c0_8] : memref<1x128x512xf32, #tpu.memory_space<vmem>>, vector<1x128x512xf32>
    %6 = vector.shape_cast %5 : vector<1x128x512xf32> to vector<128x512xf32>
    %cst_9 = arith.constant dense<0.000000e+00> : vector<8x512xf32>
    %7 = tpu.matmul %4, %6, %cst_9 {dimension_numbers = #tpu.dot_dimension_numbers<[1], [0], [0], [1], [0, 0, 1, 1], [], []>} : vector<8x128xf32>, vector<128x512xf32>, vector<8x512xf32> -> vector<8x512xf32>
    %8 = arith.addf %3, %7 : vector<8x512xf32>
    %c0_10 = arith.constant 0 : index
    %c0_11 = arith.constant 0 : index
    %c0_12 = arith.constant 0 : index
    %9 = vector.load %arg6[%c0_10, %c0_11, %c0_12] : memref<1x1x512xf32, #tpu.memory_space<vmem>>, vector<1x1x512xf32>
    %10 = vector.shape_cast %9 : vector<1x1x512xf32> to vector<1x512xf32>
    %11 = vector.broadcast %10 : vector<1x512xf32> to vector<8x512xf32>
    %12 = arith.addf %8, %11 : vector<8x512xf32>
    %13 = vector.extract_strided_slice %12 {offsets = [0, 0], sizes = [8, 128], strides = [1, 1]} : vector<8x512xf32> to vector<8x128xf32>
    %cst_13 = arith.constant 5.000000e-01 : f32
    %14 = vector.broadcast %cst_13 : f32 to vector<8x128xf32>
    %15 = arith.mulf %14, %13 : vector<8x128xf32>
    %16 = math.tanh %15 : vector<8x128xf32>
    %cst_14 = arith.constant 5.000000e-01 : f32
    %17 = vector.broadcast %cst_14 : f32 to vector<8x128xf32>
    %18 = arith.mulf %17, %16 : vector<8x128xf32>
    %cst_15 = arith.constant 5.000000e-01 : f32
    %19 = vector.broadcast %cst_15 : f32 to vector<8x128xf32>
    %20 = arith.addf %18, %19 : vector<8x128xf32>
    %21 = vector.extract_strided_slice %12 {offsets = [0, 128], sizes = [8, 128], strides = [1, 1]} : vector<8x512xf32> to vector<8x128xf32>
    %cst_16 = arith.constant 5.000000e-01 : f32
    %22 = vector.broadcast %cst_16 : f32 to vector<8x128xf32>
    %23 = arith.mulf %22, %21 : vector<8x128xf32>
    %24 = math.tanh %23 : vector<8x128xf32>
    %cst_17 = arith.constant 5.000000e-01 : f32
    %25 = vector.broadcast %cst_17 : f32 to vector<8x128xf32>
    %26 = arith.mulf %25, %24 : vector<8x128xf32>
    %cst_18 = arith.constant 5.000000e-01 : f32
    %27 = vector.broadcast %cst_18 : f32 to vector<8x128xf32>
    %28 = arith.addf %26, %27 : vector<8x128xf32>
    %29 = vector.extract_strided_slice %12 {offsets = [0, 256], sizes = [8, 128], strides = [1, 1]} : vector<8x512xf32> to vector<8x128xf32>
    %30 = math.tanh %29 : vector<8x128xf32>
    %31 = vector.extract_strided_slice %12 {offsets = [0, 384], sizes = [8, 128], strides = [1, 1]} : vector<8x512xf32> to vector<8x128xf32>
    %cst_19 = arith.constant 5.000000e-01 : f32
    %32 = vector.broadcast %cst_19 : f32 to vector<8x128xf32>
    %33 = arith.mulf %32, %31 : vector<8x128xf32>
    %34 = math.tanh %33 : vector<8x128xf32>
    %cst_20 = arith.constant 5.000000e-01 : f32
    %35 = vector.broadcast %cst_20 : f32 to vector<8x128xf32>
    %36 = arith.mulf %35, %34 : vector<8x128xf32>
    %cst_21 = arith.constant 5.000000e-01 : f32
    %37 = vector.broadcast %cst_21 : f32 to vector<8x128xf32>
    %38 = arith.addf %36, %37 : vector<8x128xf32>
    %c0_22 = arith.constant 0 : index
    %c0_23 = arith.constant 0 : index
    %39 = vector.load %arg7[%c0_22, %c0_23] : memref<8x128xf32, #tpu.memory_space<vmem>>, vector<8x128xf32>
    %40 = arith.mulf %28, %39 : vector<8x128xf32>
    %41 = arith.mulf %20, %30 : vector<8x128xf32>
    %42 = arith.addf %40, %41 : vector<8x128xf32>
    %43 = math.tanh %42 : vector<8x128xf32>
    %44 = arith.mulf %38, %43 : vector<8x128xf32>
    %c0_24 = arith.constant 0 : index
    %c0_25 = arith.constant 0 : index
    %45 = vector.load %arg9[%c0_24, %c0_25] : memref<8x128xf32, #tpu.memory_space<vmem>>, vector<8x128xf32>
    tpu.vector_store %arg9[%c0_24, %c0_25], %42 {strides = array<i32>} : memref<8x128xf32, #tpu.memory_space<vmem>>, vector<8x128xf32>,
    %c0_26 = arith.constant 0 : index
    %c0_27 = arith.constant 0 : index
    %46 = vector.load %arg8[%c0_26, %c0_27] : memref<8x128xf32, #tpu.memory_space<vmem>>, vector<8x128xf32>
    tpu.vector_store %arg8[%c0_26, %c0_27], %44 {strides = array<i32>} : memref<8x128xf32, #tpu.memory_space<vmem>>, vector<8x128xf32>,
    return
  }
  func.func @transform_0(%arg0: i32, %arg1: i32) -> (i32, i32) {
    %c0_i32 = arith.constant 0 : i32
    %c0_i32_0 = arith.constant 0 : i32
    return %arg0, %c0_i32 : i32, i32
  }
  func.func @transform_1(%arg0: i32, %arg1: i32) -> (i32, i32) {
    %c0_i32 = arith.constant 0 : i32
    %c0_i32_0 = arith.constant 0 : i32
    return %arg0, %c0_i32 : i32, i32
  }
  func.func @transform_2(%arg0: i32, %arg1: i32) -> (i32, i32, i32) {
    %c0_i32 = arith.constant 0 : i32
    %c0_i32_0 = arith.constant 0 : i32
    %c0_i32_1 = arith.constant 0 : i32
    return %arg1, %c0_i32, %c0_i32_0 : i32, i32, i32
  }
  func.func @transform_3(%arg0: i32, %arg1: i32) -> (i32, i32, i32) {
    %c0_i32 = arith.constant 0 : i32
    %c0_i32_0 = arith.constant 0 : i32
    %c0_i32_1 = arith.constant 0 : i32
    return %arg1, %c0_i32, %c0_i32_0 : i32, i32, i32
  }
  func.func @transform_4(%arg0: i32, %arg1: i32) -> (i32, i32, i32) {
    %c0_i32 = arith.constant 0 : i32
    %c0_i32_0 = arith.constant 0 : i32
    %c0_i32_1 = arith.constant 0 : i32
    return %arg1, %c0_i32, %c0_i32_0 : i32, i32, i32
  }
  func.func @transform_5(%arg0: i32, %arg1: i32) -> (i32, i32) {
    %c0_i32 = arith.constant 0 : i32
    return %arg0, %arg1 : i32, i32
  }
  func.func @transform_6(%arg0: i32, %arg1: i32) -> (i32, i32) {
    %c0_i32 = arith.constant 0 : i32
    return %arg0, %arg1 : i32, i32
  }
  func.func @transform_7(%arg0: i32, %arg1: i32) -> (i32, i32) {
    %c0_i32 = arith.constant 0 : i32
    return %arg0, %arg1 : i32, i32
  }
}

</mosaic_0001>

<bundles_post_ra>
// kernel: lstm_cell.1
= control target key start
LH: loop header
LB: loop body
LE: loop exit
PB: predicated region body
PF: predicated region fallthrough
CT: control target
= control target key end

     0   :  { %13 = vsyncpa [#allocation3], 0  ;;  %s726_s0 = inlined_call_operand.vmem [shape: f32[8,128], index: 0, kind: input, shape index: {}]   ;;  %s727_s1 = inlined_call_operand.vmem [shape: f32[8,128], index: 1, kind: input, shape index: {}]   ;;  %s728_s2 = inlined_call_operand.hbm [shape: f32[1,128,512], index: 2, kind: input, shape index: {}]   ;;  %s729_s3 = inlined_call_operand.hbm [shape: f32[1,128,512], index: 3, kind: input, shape index: {}]   ;;  %s730_s4 = inlined_call_operand.vmem [shape: f32[1,1,512], index: 4, kind: input, shape index: {}]   ;;  %s731_s5 = inlined_call_operand.vmem [shape: f32[8,128], index: 5, kind: input, shape index: {}]   ;;  %s732_s6 = inlined_call_operand.hbm [shape: f32[8,128], index: 6, kind: output, shape index: {0}]   ;;  %s733_s7 = inlined_call_operand.hbm [shape: f32[8,128], index: 7, kind: output, shape index: {1}]  }
   0x1   :  { %14 = vsyncpa [#allocation6], 0 }
   0x2   :  { %15 = vsyncpa [#allocation4], 0 }
   0x3   :  { %16 = vsyncpa [#allocation9], 0  ;;  %s651_s24 = smov [#allocation2]  }
   0x4   :  { %s26_s25 = sshll.u32 %s651_s24, 4  ;;  %s27_s25 = int_to_ptr.vmem [resolvable:$true] %s26_s25 }
   0x5   :  { %s571_s26 = scalar_lea.vmem %s27_s25, 8192  ;;  %p576_p1 = scmp.lt.s32.totalorder %s27_s25, %s27_s25 }
   0x6   :  { %p572_p0 = scmp.ne.s32.totalorder %s27_s25, %s571_s26  ;;  %p577_p2 = scmp.lt.s32.totalorder %s571_s26, %s571_s26 }
   0x8   :  { %p578_p3 = por %p577_p2, %p576_p1 }
   0xa   :  { %p579_p4 = pnand %p578_p3, %p572_p0 }
   0xc   :  { %582 = shalt.err (!%p579_p4)
}
   0xd   :  { %s652_s27 = smov 512   ;;  %s653_s28 = smov 32  }
   0xe   :  { %32 = dma.hbm_to_vmem [thread:$0]  %s728_s2, 8192, %s27_s25, [#allocation3], %s652_s27, %s652_s27, %s653_s28  }
   0xf   :  { %s654_s8 = smov [#allocation5]  }
  0x10   :  { %s38_s9 = sshll.u32 %s654_s8, 4  ;;  %s39_s9 = int_to_ptr.vmem [resolvable:$true] %s38_s9 }
  0x11   :  { %s591_s10 = scalar_lea.vmem %s39_s9, 8192  ;;  %p596_p6 = scmp.lt.s32.totalorder %s39_s9, %s39_s9 }
  0x12   :  { %p592_p5 = scmp.ne.s32.totalorder %s39_s9, %s591_s10  ;;  %p597_p7 = scmp.lt.s32.totalorder %s591_s10, %s591_s10 }
  0x14   :  { %p598_p8 = por %p597_p7, %p596_p6 }
  0x16   :  { %p599_p9 = pnand %p598_p8, %p592_p5 }
  0x18   :  { %602 = shalt.err (!%p599_p9)
}
  0x19   :  { %44 = dma.hbm_to_vmem [thread:$0]  %s729_s3, 8192, %s39_s9, [#allocation6], %s652_s27, %s652_s27, %s653_s28  }
  0x1a   :  { %643 = dma.done.wait [#allocation3], 8192  }
  0x1b   :  { %644 = vsyncadd [#allocation3], 4294959104 }
  0x1c   :  { %645 = dma.done.wait [#allocation6], 8192  }
  0x1d   :  { %646 = vsyncadd [#allocation6], 4294959104  ;;  %v655_v0 = vmov 0.0   ;;  %v182_v1 = vld [vmem:[#allocation5 + $0x1e8] sm:$0xff]  ;;  %v184_v2 = vld [vmem:[#allocation5 + $0x1f8] sm:$0xff]  ;;  %s656_s16 = smov [#allocation8]  }
  0x1e   :  { %249 = vmatprep.mubr.f32.mxu0 %v655_v0  ;;  %320 = vmatprep.mubr.f32.mxu1 %v655_v0  ;;  %v181_v3 = vld [vmem:[#allocation5 + $0x1e0] sm:$0xff]  ;;  %v183_v4 = vld [vmem:[#allocation5 + $0x1f0] sm:$0xff]  ;;  %v178_v5 = vld [vmem:[#allocation5 + $0x1c8] sm:$0xff]  ;;  %s532_s17 = sshll.u32 %s656_s16, 4  ;;  %s533_s17 = int_to_ptr.vmem [resolvable:$true] %s532_s17 }
  0x1f   :  { %185 = vmatprep.subr.mxu0 %v182_v1  ;;  %256 = vmatprep.subr.mxu1 %v184_v2  ;;  %v180_v6 = vld [vmem:[#allocation5 + $0x1d8] sm:$0xff]  ;;  %v177_v7 = vld [vmem:[#allocation5 + $0x1c0] sm:$0xff]  ;;  %v179_v8 = vld [vmem:[#allocation5 + $0x1d0] sm:$0xff]  ;;  %s603_s18 = scalar_lea.vmem %s533_s17, 128  ;;  %p608_p11 = scmp.lt.s32.totalorder %s533_s17, %s533_s17 }
  0x20   :  { %186 = vmatpush1.msra.mxu0 %v181_v3  ;;  %257 = vmatpush1.msra.mxu1 %v183_v4  ;;  %v174_v9 = vld [vmem:[#allocation5 + $0x1a8] sm:$0xff]  ;;  %v176_v10 = vld [vmem:[#allocation5 + $0x1b8] sm:$0xff]  ;;  %v173_v11 = vld [vmem:[#allocation5 + $0x1a0] sm:$0xff]  ;;  %p604_p10 = scmp.ne.s32.totalorder %s533_s17, %s603_s18  ;;  %p609_p12 = scmp.lt.s32.totalorder %s603_s18, %s603_s18 }
  0x21   :  { %187 = vmatprep.subr.mxu0 %v178_v5  ;;  %258 = vmatprep.subr.mxu1 %v180_v6  ;;  %v175_v12 = vld [vmem:[#allocation5 + $0x1b0] sm:$0xff]  ;;  %v170_v13 = vld [vmem:[#allocation5 + $0x188] sm:$0xff]  ;;  %v172_v14 = vld [vmem:[#allocation5 + $0x198] sm:$0xff] }
  0x22   :  { %188 = vmatpush1.msra.mxu0 %v177_v7  ;;  %259 = vmatpush1.msra.mxu1 %v179_v8  ;;  %v169_v15 = vld [vmem:[#allocation5 + $0x180] sm:$0xff]  ;;  %v171_v16 = vld [vmem:[#allocation5 + $0x190] sm:$0xff]  ;;  %v166_v17 = vld [vmem:[#allocation5 + $0x168] sm:$0xff]  ;;  %p610_p13 = por %p609_p12, %p608_p11 }
  0x23   :  { %189 = vmatprep.subr.mxu0 %v174_v9  ;;  %260 = vmatprep.subr.mxu1 %v176_v10  ;;  %v168_v18 = vld [vmem:[#allocation5 + $0x178] sm:$0xff]  ;;  %v165_v19 = vld [vmem:[#allocation5 + $0x160] sm:$0xff]  ;;  %v167_v20 = vld [vmem:[#allocation5 + $0x170] sm:$0xff] }
  0x24   :  { %190 = vmatpush1.msra.mxu0 %v173_v11  ;;  %261 = vmatpush1.msra.mxu1 %v175_v12  ;;  %v162_v21 = vld [vmem:[#allocation5 + $0x148] sm:$0xff]  ;;  %v164_v22 = vld [vmem:[#allocation5 + $0x158] sm:$0xff]  ;;  %v161_v23 = vld [vmem:[#allocation5 + $0x140] sm:$0xff]  ;;  %p611_p0 = pnand %p610_p13, %p604_p10 }
  0x25   :  { %191 = vmatprep.subr.mxu0 %v170_v13  ;;  %262 = vmatprep.subr.mxu1 %v172_v14  ;;  %v163_v24 = vld [vmem:[#allocation5 + $0x150] sm:$0xff]  ;;  %v158_v25 = vld [vmem:[#allocation5 + $0x128] sm:$0xff]  ;;  %v160_v26 = vld [vmem:[#allocation5 + $0x138] sm:$0xff] }
  0x26   :  { %192 = vmatpush1.msra.mxu0 %v169_v15  ;;  %263 = vmatpush1.msra.mxu1 %v171_v16  ;;  %v157_v27 = vld [vmem:[#allocation5 + $0x120] sm:$0xff]  ;;  %v159_v28 = vld [vmem:[#allocation5 + $0x130] sm:$0xff]  ;;  %v154_v29 = vld [vmem:[#allocation5 + $0x108] sm:$0xff] }
  0x27   :  { %193 = vmatprep.subr.mxu0 %v166_v17  ;;  %264 = vmatprep.subr.mxu1 %v168_v18  ;;  %v156_v30 = vld [vmem:[#allocation5 + $0x118] sm:$0xff]  ;;  %v153_v31 = vld [vmem:[#allocation5 + $0x100] sm:$0xff]  ;;  %v155_v32 = vld [vmem:[#allocation5 + $0x110] sm:$0xff] }
  0x28   :  { %194 = vmatpush1.msra.mxu0 %v165_v19  ;;  %265 = vmatpush1.msra.mxu1 %v167_v20  ;;  %v150_v33 = vld [vmem:[#allocation5 + $0xe8] sm:$0xff]  ;;  %v152_v34 = vld [vmem:[#allocation5 + $0xf8] sm:$0xff]  ;;  %v149_v35 = vld [vmem:[#allocation5 + $0xe0] sm:$0xff] }
  0x29   :  { %195 = vmatprep.subr.mxu0 %v162_v21  ;;  %266 = vmatprep.subr.mxu1 %v164_v22  ;;  %v151_v36 = vld [vmem:[#allocation5 + $0xf0] sm:$0xff]  ;;  %v146_v37 = vld [vmem:[#allocation5 + $0xc8] sm:$0xff]  ;;  %v148_v38 = vld [vmem:[#allocation5 + $0xd8] sm:$0xff] }
  0x2a   :  { %196 = vmatpush1.msra.mxu0 %v161_v23  ;;  %267 = vmatpush1.msra.mxu1 %v163_v24  ;;  %v145_v39 = vld [vmem:[#allocation5 + $0xc0] sm:$0xff]  ;;  %v147_v40 = vld [vmem:[#allocation5 + $0xd0] sm:$0xff]  ;;  %v142_v41 = vld [vmem:[#allocation5 + $0xa8] sm:$0xff] }
  0x2b   :  { %197 = vmatprep.subr.mxu0 %v158_v25  ;;  %268 = vmatprep.subr.mxu1 %v160_v26  ;;  %v144_v42 = vld [vmem:[#allocation5 + $0xb8] sm:$0xff]  ;;  %v141_v43 = vld [vmem:[#allocation5 + $0xa0] sm:$0xff]  ;;  %v143_v44 = vld [vmem:[#allocation5 + $0xb0] sm:$0xff] }
  0x2c   :  { %198 = vmatpush1.msra.mxu0 %v157_v27  ;;  %269 = vmatpush1.msra.mxu1 %v159_v28  ;;  %v138_v45 = vld [vmem:[#allocation5 + $0x88] sm:$0xff]  ;;  %v140_v46 = vld [vmem:[#allocation5 + $0x98] sm:$0xff]  ;;  %v137_v47 = vld [vmem:[#allocation5 + $0x80] sm:$0xff] }
  0x2d   :  { %199 = vmatprep.subr.mxu0 %v154_v29  ;;  %270 = vmatprep.subr.mxu1 %v156_v30  ;;  %v139_v48 = vld [vmem:[#allocation5 + $0x90] sm:$0xff]  ;;  %v134_v49 = vld [vmem:[#allocation5 + $0x68] sm:$0xff]  ;;  %v136_v50 = vld [vmem:[#allocation5 + $0x78] sm:$0xff] }
  0x2e   :  { %200 = vmatpush1.msra.mxu0 %v153_v31  ;;  %271 = vmatpush1.msra.mxu1 %v155_v32  ;;  %v133_v51 = vld [vmem:[#allocation5 + $0x60] sm:$0xff]  ;;  %v135_v52 = vld [vmem:[#allocation5 + $0x70] sm:$0xff]  ;;  %v130_v53 = vld [vmem:[#allocation5 + $0x48] sm:$0xff] }
  0x2f   :  { %201 = vmatprep.subr.mxu0 %v150_v33  ;;  %272 = vmatprep.subr.mxu1 %v152_v34  ;;  %v132_v54 = vld [vmem:[#allocation5 + $0x58] sm:$0xff]  ;;  %v129_v55 = vld [vmem:[#allocation5 + $0x40] sm:$0xff]  ;;  %v131_v56 = vld [vmem:[#allocation5 + $0x50] sm:$0xff] }
  0x30   :  { %202 = vmatpush1.msra.mxu0 %v149_v35  ;;  %273 = vmatpush1.msra.mxu1 %v151_v36  ;;  %v126_v57 = vld [vmem:[#allocation5 + $0x28] sm:$0xff]  ;;  %v128_v58 = vld [vmem:[#allocation5 + $0x38] sm:$0xff]  ;;  %v125_v59 = vld [vmem:[#allocation5 + $0x20] sm:$0xff] }
  0x31   :  { %203 = vmatprep.subr.mxu0 %v146_v37  ;;  %274 = vmatprep.subr.mxu1 %v148_v38  ;;  %v127_v60 = vld [vmem:[#allocation5 + $0x30] sm:$0xff]  ;;  %v122_v61 = vld [vmem:[#allocation5 + $0x8] sm:$0xff]  ;;  %v124_v62 = vld [vmem:[#allocation5 + $0x18] sm:$0xff] }
  0x32   :  { %204 = vmatpush1.msra.mxu0 %v145_v39  ;;  %275 = vmatpush1.msra.mxu1 %v147_v40  ;;  %v121_v63 = vld [vmem:[#allocation5] sm:$0xff]  ;;  %v123_v1 = vld [vmem:[#allocation5 + $0x10] sm:$0xff]  ;;  %v117_v3 = vld [vmem:[#allocation2 + $0x1e8] sm:$0xff] }
  0x33   :  { %205 = vmatprep.subr.mxu0 %v142_v41  ;;  %276 = vmatprep.subr.mxu1 %v144_v42  ;;  %v120_v2 = vld [vmem:[%s727_s1] sm:$0xff]  ;;  %v119_v4 = vld [vmem:[#allocation2 + $0x1f8] sm:$0xff]  ;;  %v118_v6 = vld [vmem:[#allocation2 + $0x1f0] sm:$0xff] }
  0x34   :  { %206 = vmatpush1.msra.mxu0 %v141_v43  ;;  %277 = vmatpush1.msra.mxu1 %v143_v44  ;;  %v116_v5 = vld [vmem:[#allocation2 + $0x1e0] sm:$0xff]  ;;  %v113_v7 = vld [vmem:[#allocation2 + $0x1c8] sm:$0xff]  ;;  %v115_v8 = vld [vmem:[#allocation2 + $0x1d8] sm:$0xff] }
  0x35   :  { %207 = vmatprep.subr.mxu0 %v138_v45  ;;  %278 = vmatprep.subr.mxu1 %v140_v46  ;;  %v112_v9 = vld [vmem:[#allocation2 + $0x1c0] sm:$0xff]  ;;  %v114_v10 = vld [vmem:[#allocation2 + $0x1d0] sm:$0xff]  ;;  %v109_v11 = vld [vmem:[#allocation2 + $0x1a8] sm:$0xff] }
  0x36   :  { %208 = vmatpush1.msra.mxu0 %v137_v47  ;;  %279 = vmatpush1.msra.mxu1 %v139_v48  ;;  %v111_v12 = vld [vmem:[#allocation2 + $0x1b8] sm:$0xff]  ;;  %v108_v13 = vld [vmem:[#allocation2 + $0x1a0] sm:$0xff]  ;;  %v110_v14 = vld [vmem:[#allocation2 + $0x1b0] sm:$0xff] }
  0x37   :  { %209 = vmatprep.subr.mxu0 %v134_v49  ;;  %280 = vmatprep.subr.mxu1 %v136_v50  ;;  %v105_v15 = vld [vmem:[#allocation2 + $0x188] sm:$0xff]  ;;  %v107_v16 = vld [vmem:[#allocation2 + $0x198] sm:$0xff]  ;;  %v104_v17 = vld [vmem:[#allocation2 + $0x180] sm:$0xff] }
  0x38   :  { %210 = vmatpush1.msra.mxu0 %v133_v51  ;;  %281 = vmatpush1.msra.mxu1 %v135_v52  ;;  %v106_v18 = vld [vmem:[#allocation2 + $0x190] sm:$0xff]  ;;  %v101_v19 = vld [vmem:[#allocation2 + $0x168] sm:$0xff]  ;;  %v103_v20 = vld [vmem:[#allocation2 + $0x178] sm:$0xff] }
  0x39   :  { %211 = vmatprep.subr.mxu0 %v130_v53  ;;  %282 = vmatprep.subr.mxu1 %v132_v54  ;;  %v100_v21 = vld [vmem:[#allocation2 + $0x160] sm:$0xff]  ;;  %v102_v22 = vld [vmem:[#allocation2 + $0x170] sm:$0xff]  ;;  %v97_v23 = vld [vmem:[#allocation2 + $0x148] sm:$0xff] }
  0x3a   :  { %212 = vmatpush1.msra.mxu0 %v129_v55  ;;  %283 = vmatpush1.msra.mxu1 %v131_v56  ;;  %v99_v24 = vld [vmem:[#allocation2 + $0x158] sm:$0xff]  ;;  %v96_v25 = vld [vmem:[#allocation2 + $0x140] sm:$0xff]  ;;  %v98_v26 = vld [vmem:[#allocation2 + $0x150] sm:$0xff] }
  0x3b   :  { %213 = vmatprep.subr.mxu0 %v126_v57  ;;  %284 = vmatprep.subr.mxu1 %v128_v58  ;;  %v93_v27 = vld [vmem:[#allocation2 + $0x128] sm:$0xff]  ;;  %v95_v28 = vld [vmem:[#allocation2 + $0x138] sm:$0xff]  ;;  %v92_v29 = vld [vmem:[#allocation2 + $0x120] sm:$0xff] }
  0x3c   :  { %214 = vmatpush1.msra.mxu0 %v125_v59  ;;  %285 = vmatpush1.msra.mxu1 %v127_v60  ;;  %v94_v30 = vld [vmem:[#allocation2 + $0x130] sm:$0xff]  ;;  %v89_v31 = vld [vmem:[#allocation2 + $0x108] sm:$0xff]  ;;  %v91_v32 = vld [vmem:[#allocation2 + $0x118] sm:$0xff] }
  0x3d   :  { %215 = vmatprep.subr.mxu0 %v122_v61  ;;  %286 = vmatprep.subr.mxu1 %v124_v62  ;;  %v88_v33 = vld [vmem:[#allocation2 + $0x100] sm:$0xff]  ;;  %v90_v34 = vld [vmem:[#allocation2 + $0x110] sm:$0xff]  ;;  %v85_v35 = vld [vmem:[#allocation2 + $0xe8] sm:$0xff] }
  0x3e   :  { %216 = vmatpush1.msra.mxu0 %v121_v63  ;;  %287 = vmatpush1.msra.mxu1 %v123_v1  ;;  %v87_v36 = vld [vmem:[#allocation2 + $0xf8] sm:$0xff]  ;;  %v84_v37 = vld [vmem:[#allocation2 + $0xe0] sm:$0xff]  ;;  %v86_v38 = vld [vmem:[#allocation2 + $0xf0] sm:$0xff] }
  0x3f   :  { %250 = vmatmul.mubr.f32.vlgmr.msra.gmra.mxu0 %v120_v2  ;;  %327 = vmatprep.subr.mxu0 %v117_v3  ;;  %v81_v39 = vld [vmem:[#allocation2 + $0xc8] sm:$0xff]  ;;  %v83_v40 = vld [vmem:[#allocation2 + $0xd8] sm:$0xff]  ;;  %v80_v41 = vld [vmem:[#allocation2 + $0xc0] sm:$0xff] }
  0x40   :  { %398 = vmatprep.subr.mxu1 %v119_v4  ;;  %321 = vmatmul.mubr.f32.vlgmr.msra.gmra.mxu1 %v120_v2  ;;  %v82_v42 = vld [vmem:[#allocation2 + $0xd0] sm:$0xff]  ;;  %v77_v43 = vld [vmem:[#allocation2 + $0xa8] sm:$0xff]  ;;  %v79_v44 = vld [vmem:[#allocation2 + $0xb8] sm:$0xff] }
  0x41   :  { %328 = vmatpush1.msra.mxu0 %v116_v5  ;;  %399 = vmatpush1.msra.mxu1 %v118_v6  ;;  %v76_v45 = vld [vmem:[#allocation2 + $0xa0] sm:$0xff]  ;;  %v78_v46 = vld [vmem:[#allocation2 + $0xb0] sm:$0xff]  ;;  %v73_v47 = vld [vmem:[#allocation2 + $0x88] sm:$0xff]  ;;  %v471_v5 = vlaneseq }
  0x42   :  { %329 = vmatprep.subr.mxu0 %v113_v7  ;;  %400 = vmatprep.subr.mxu1 %v115_v8  ;;  %v75_v48 = vld [vmem:[#allocation2 + $0x98] sm:$0xff]  ;;  %v72_v49 = vld [vmem:[#allocation2 + $0x80] sm:$0xff]  ;;  %v74_v50 = vld [vmem:[#allocation2 + $0x90] sm:$0xff] }
  0x43   :  { %330 = vmatpush1.msra.mxu0 %v112_v9  ;;  %401 = vmatpush1.msra.mxu1 %v114_v10  ;;  %v69_v51 = vld [vmem:[#allocation2 + $0x68] sm:$0xff]  ;;  %v71_v52 = vld [vmem:[#allocation2 + $0x78] sm:$0xff]  ;;  %v68_v53 = vld [vmem:[#allocation2 + $0x60] sm:$0xff]  ;;  %v472_v6 = vshrl.u32 %v471_v5, 7 }
  0x44   :  { %331 = vmatprep.subr.mxu0 %v109_v11  ;;  %402 = vmatprep.subr.mxu1 %v111_v12  ;;  %v70_v54 = vld [vmem:[#allocation2 + $0x70] sm:$0xff]  ;;  %v65_v55 = vld [vmem:[#allocation2 + $0x48] sm:$0xff]  ;;  %v67_v56 = vld [vmem:[#allocation2 + $0x58] sm:$0xff] }
  0x45   :  { %332 = vmatpush1.msra.mxu0 %v108_v13  ;;  %403 = vmatpush1.msra.mxu1 %v110_v14  ;;  %v64_v57 = vld [vmem:[#allocation2 + $0x40] sm:$0xff]  ;;  %v66_v58 = vld [vmem:[#allocation2 + $0x50] sm:$0xff]  ;;  %v61_v59 = vld [vmem:[#allocation2 + $0x28] sm:$0xff]  ;;  %v473_v8 = vsub.s32 0, %v472_v6  ;;  %v477_v11 = vsub.s32 1, %v472_v6 }
  0x46   :  { %333 = vmatprep.subr.mxu0 %v105_v15  ;;  %404 = vmatprep.subr.mxu1 %v107_v16  ;;  %v63_v60 = vld [vmem:[#allocation2 + $0x38] sm:$0xff]  ;;  %v60_v61 = vld [vmem:[#allocation2 + $0x20] sm:$0xff]  ;;  %v62_v62 = vld [vmem:[#allocation2 + $0x30] sm:$0xff] }
  0x47   :  { %334 = vmatpush1.msra.mxu0 %v104_v17  ;;  %405 = vmatpush1.msra.mxu1 %v106_v18  ;;  %v57_v63 = vld [vmem:[#allocation2 + $0x8] sm:$0xff]  ;;  %v59_v1 = vld [vmem:[#allocation2 + $0x18] sm:$0xff]  ;;  %v56_v2 = vld [vmem:[#allocation2] sm:$0xff]  ;;  %v481_v17 = vsub.s32 2, %v472_v6 }
  0x48   :  { %335 = vmatprep.subr.mxu0 %v101_v19  ;;  %406 = vmatprep.subr.mxu1 %v103_v20  ;;  %v58_v3 = vld [vmem:[#allocation2 + $0x10] sm:$0xff]  ;;  %v55_v4 = vld [vmem:[%s726_s0] sm:$0xff] }
  0x49   :  { %336 = vmatpush1.msra.mxu0 %v100_v21  ;;  %407 = vmatpush1.msra.mxu1 %v102_v22  ;;  %v469_v10 = vld [vmem:[%s730_s4] sm:$0xf] }
  0x4a   :  { %337 = vmatprep.subr.mxu0 %v97_v23  ;;  %408 = vmatprep.subr.mxu1 %v99_v24  ;;  %v474_v13 = vrot.slane %v469_v10, %v473_v8  ;;  %v478_v18 = vrot.slane %v469_v10, %v477_v11  ;;  %v482_v24 = vrot.slane %v469_v10, %v481_v17 }
  0x4b   :  { %338 = vmatpush1.msra.mxu0 %v96_v25  ;;  %409 = vmatpush1.msra.mxu1 %v98_v26 }
  0x4c   :  { %339 = vmatprep.subr.mxu0 %v93_v27  ;;  %410 = vmatprep.subr.mxu1 %v95_v28  ;;  %v485_v27 = vsub.s32 3, %v472_v6 }
  0x4d   :  { %340 = vmatpush1.msra.mxu0 %v92_v29  ;;  %411 = vmatpush1.msra.mxu1 %v94_v30 }
  0x4e   :  { %341 = vmatprep.subr.mxu0 %v89_v31  ;;  %412 = vmatprep.subr.mxu1 %v91_v32  ;;  %v486_v31 = vrot.slane %v469_v10, %v485_v27 }
  0x4f   :  { %342 = vmatpush1.msra.mxu0 %v88_v33  ;;  %413 = vmatpush1.msra.mxu1 %v90_v34 }
  0x50   :  { %343 = vmatprep.subr.mxu0 %v85_v35  ;;  %414 = vmatprep.subr.mxu1 %v87_v36 }
  0x51   :  { %344 = vmatpush1.msra.mxu0 %v84_v37  ;;  %415 = vmatpush1.msra.mxu1 %v86_v38 }
  0x52   :  { %345 = vmatprep.subr.mxu0 %v81_v39  ;;  %416 = vmatprep.subr.mxu1 %v83_v40  ;;  %v508_v39 = vld [vmem:[%s731_s5] sm:$0xff] }
  0x53   :  { %346 = vmatpush1.msra.mxu0 %v80_v41  ;;  %417 = vmatpush1.msra.mxu1 %v82_v42 }
  0x54   :  { %347 = vmatprep.subr.mxu0 %v77_v43  ;;  %418 = vmatprep.subr.mxu1 %v79_v44 }
  0x55   :  { %348 = vmatpush1.msra.mxu0 %v76_v45  ;;  %419 = vmatpush1.msra.mxu1 %v78_v46 }
  0x56   :  { %349 = vmatprep.subr.mxu0 %v73_v47  ;;  %420 = vmatprep.subr.mxu1 %v75_v48 }
  0x57   :  { %350 = vmatpush1.msra.mxu0 %v72_v49  ;;  %421 = vmatpush1.msra.mxu1 %v74_v50 }
  0x58   :  { %351 = vmatprep.subr.mxu0 %v69_v51  ;;  %422 = vmatprep.subr.mxu1 %v71_v52 }
  0x59   :  { %352 = vmatpush1.msra.mxu0 %v68_v53  ;;  %423 = vmatpush1.msra.mxu1 %v70_v54 }
  0x5a   :  { %353 = vmatprep.subr.mxu0 %v65_v55  ;;  %424 = vmatprep.subr.mxu1 %v67_v56 }
  0x5b   :  { %354 = vmatpush1.msra.mxu0 %v64_v57  ;;  %425 = vmatpush1.msra.mxu1 %v66_v58 }
  0x5c   :  { %355 = vmatprep.subr.mxu0 %v61_v59  ;;  %426 = vmatprep.subr.mxu1 %v63_v60 }
  0x5d   :  { %356 = vmatpush1.msra.mxu0 %v60_v61  ;;  %427 = vmatpush1.msra.mxu1 %v62_v62 }
  0x5e   :  { %357 = vmatprep.subr.mxu0 %v57_v63  ;;  %428 = vmatprep.subr.mxu1 %v59_v1 }
  0x5f   :  { %358 = vmatpush1.msra.mxu0 %v56_v2  ;;  %391 = vmatprep.mubr.f32.mxu0 %v655_v0 }
  0x60   :  { %429 = vmatpush1.msra.mxu1 %v58_v3  ;;  %462 = vmatprep.mubr.f32.mxu1 %v655_v0 }
  0x61   :  { %392 = vmatmul.mubr.f32.vlgmr.msra.gmra.mxu0 %v55_v4  ;;  %463 = vmatmul.mubr.f32.vlgmr.msra.gmra.mxu1 %v55_v4 }
  0xff   :  { %v251_v7 = vpop.f32.mrf.mxu0 }
 0x100   :  { %v322_v9 = vpop.f32.mrf.mxu1 }
 0x101   :  { %v253_v12 = vpop.f32.mrf.mxu0 }
 0x102   :  { %v324_v14 = vpop.f32.mrf.mxu1 }
 0x121   :  { %v393_v15 = vpop.f32.mrf.mxu0  ;;  %v464_v0 = vpop.f32.mrf.mxu1 }
 0x122   :  { %v394_v16 = vadd.f32 %v393_v15, %v251_v7  ;;  %v465_v23 = vadd.f32 %v464_v0, %v322_v9 }
 0x123   :  { %v395_v19 = vpop.f32.mrf.mxu0  ;;  %v466_v28 = vpop.f32.mrf.mxu1 }
 0x124   :  { %v491_v20 = vadd.f32 %v474_v13, %v394_v16  ;;  %v396_v21 = vadd.f32 %v395_v19, %v253_v12  ;;  %v493_v29 = vadd.f32 %v482_v24, %v465_v23  ;;  %v467_v30 = vadd.f32 %v466_v28, %v324_v14 }
 0x126   :  { %v495_v22 = vmul.f32 0.5, %v491_v20  ;;  %v492_v25 = vadd.f32 %v478_v18, %v396_v21  ;;  %v494_v32 = vadd.f32 %v486_v31, %v467_v30 }
 0x128   :  { %553 = vtanh.f32 %v495_v22  ;;  %v499_v26 = vmul.f32 0.5, %v492_v25  ;;  %v504_v33 = vmul.f32 0.5, %v494_v32 }
 0x12a   :  { %555 = vtanh.f32 %v499_v26 }
 0x12b   :  { %557 = vtanh.f32 %v493_v29 }
 0x12c   :  { %559 = vtanh.f32 %v504_v33 }
 0x135   :  { %v554_v34 = vpop.eup %553 }
 0x136   :  { %v497_v35 = vmul.f32 0.5, %v554_v34 }
 0x137   :  { %v556_v36 = vpop.eup %555 }
 0x138   :  { %v498_v37 = vadd.f32 0.5, %v497_v35  ;;  %v501_v38 = vmul.f32 0.5, %v556_v36  ;;  %v558_v41 = vpop.eup %557 }
 0x13a   :  { %v502_v40 = vadd.f32 0.5, %v501_v38  ;;  %v510_v43 = vmul.f32 %v558_v41, %v498_v37 }
 0x13c   :  { %v509_v42 = vmul.f32 %v508_v39, %v502_v40 }
 0x13e   :  { %v511_v44 = vadd.f32 %v510_v43, %v509_v42 }
 0x140   :  { %561 = vtanh.f32 %v511_v44  ;;  %514 = vst [vmem:[#allocation8] sm:$0xff] %v511_v44 }
 0x141   :  { %614 = shalt.err (!%p611_p0)
}
 0x142   :  { %535 = dma.vmem_to_hbm [thread:$0]  %s533_s17, 128, %s733_s7, [#allocation9]   ;;  %v560_v45 = vpop.eup %559 }
 0x143   :  { %v506_v46 = vmul.f32 0.5, %v560_v45  ;;  %s657_s5 = smov [#allocation7]  }
 0x144   :  { %s522_s21 = sshll.u32 %s657_s5, 4  ;;  %s523_s21 = int_to_ptr.vmem [resolvable:$true] %s522_s21 }
 0x145   :  { %v507_v47 = vadd.f32 0.5, %v506_v46  ;;  %s623_s22 = scalar_lea.vmem %s523_s21, 128  ;;  %p628_p2 = scmp.lt.s32.totalorder %s523_s21, %s523_s21 }
 0x146   :  { %p624_p1 = scmp.ne.s32.totalorder %s523_s21, %s623_s22  ;;  %p629_p3 = scmp.lt.s32.totalorder %s623_s22, %s623_s22 }
 0x148   :  { %p630_p4 = por %p629_p3, %p628_p2 }
 0x14a   :  { %p631_p5 = pnand %p630_p4, %p624_p1 }
 0x14d   :  { %v562_v48 = vpop.eup %561 }
 0x14e   :  { %v513_v49 = vmul.f32 %v562_v48, %v507_v47 }
 0x150   :  { %515 = vst [vmem:[#allocation7] sm:$0xff] %v513_v49 }
 0x151   :  { %634 = shalt.err (!%p631_p5)
}
 0x152   :  { %525 = dma.vmem_to_hbm [thread:$0]  %s523_s21, 128, %s732_s6, [#allocation4]  }
 0x153   :  { %647 = dma.done.wait [#allocation4], 128  }
 0x154   :  { %648 = vsyncadd [#allocation4], 4294967168 }
 0x155   :  { %649 = dma.done.wait [#allocation9], 128  }
 0x156   :  { %650 = vsyncadd [#allocation9], 4294967168 }
 0x157   :  { %542 = vsyncpa [#allocation3], 1 }
 0x158   :  { %543 = vsyncpa [#allocation6], 1 }
 0x159   :  { %544 = vsyncpa [#allocation4], 1 }
 0x15a   :  { %545 = vsyncpa [#allocation9], 1 }

</bundles_post_ra>
